<compile_context>
chip_gen: v7x
topology: tpu7x:2x2x1
jax: 0.10.0
libtpu: 0.0.40
codegen_flags: <defaults>
</compile_context>

<pallas_src>
import jax
import jax.numpy as jnp
from jax import lax
from jax.experimental import pallas as pl
from jax.experimental.pallas import tpu as pltpu


def _mf_fused_kernel(me_ref,      # VMEM f32 [B, dim]        gathered P[model_id]
                     w_comb_ref,  # VMEM f32 [H, dim]        fused up_proj . text_proj
                     w_cls_ref,   # VMEM f32 [C, dim]        torch Linear layout
                     hidden_ref,  # VMEM     [1, tS, H]      BERT token embeds (tile)
                     mask_ref,    # VMEM f32 [1, 1, 1, tS]   attention mask (tile)
                     out_ref,     # VMEM f32 [1, B, C]
                     acc_emb,     # VMEM f32 [1, H]  scratch: masked token sum
                     acc_cnt):    # VMEM f32 [1, 1]  scratch: token count
    s = pl.program_id(1)

    @pl.when(s == 0)
    def _init():
        acc_emb[...] = jnp.zeros_like(acc_emb)
        acc_cnt[...] = jnp.zeros_like(acc_cnt)

    # BertEmbeddingModel.encode pooling: masked token-sum of this sequence tile
    # as an MXU matmul [1,tS]@[tS,H] with f32 accumulation (mask is 0/1, exact
    # in any dtype) -- avoids a cross-sublane VPU/XLU reduction per step.
    mask = mask_ref[0, 0]                                            # [1, tS] f32
    acc_emb[...] += jnp.dot(mask.astype(hidden_ref.dtype), hidden_ref[0],
                            preferred_element_type=jnp.float32)      # [1, H]
    acc_cnt[...] += jnp.sum(mask, axis=1, keepdims=True)             # [1, 1]

    @pl.when(s == pl.num_programs(1) - 1)
    def _finalize():
        # mean pool; clamp matches torch.clamp(min=1e-9). Exact divide (cost is
        # negligible; keeps parity with the torch f32 path).
        pooled = acc_emb[...] / jnp.maximum(acc_cnt[...], 1e-9)      # [1, H]
        # fused up_proj + text_proj: one f32 matmul, f32 accumulation.
        prompt = jnp.dot(pooled, w_comb_ref[...],
                         preferred_element_type=jnp.float32)         # [1, dim]

        # F.normalize(P[model_id], p=2, dim=1) (eps=1e-12), vectorized over B.
        me = me_ref[...]                                             # [B, dim]
        inv_norm = lax.rsqrt(
            jnp.maximum(jnp.sum(me * me, axis=1, keepdims=True), 1e-24))
        x = (me * inv_norm) * prompt                                 # [B, dim]

        w_cls = w_cls_ref[...]                                       # [C, dim]
        if w_cls_ref.shape[0] == 1:
            # num_classes == 1: VPU multiply + lane reduce beats a skinny (N=1)
            # MXU matmul and keeps the MXU free.
            out_ref[0] = jnp.sum(x * w_cls, axis=1, keepdims=True)   # [B, 1]
        else:
            out_ref[0] = lax.dot_general(
                x, w_cls, (((1,), (1,)), ((), ())),
                preferred_element_type=jnp.float32)                  # [B, C]


def make_mf_forward(P, w_cls, w_up=None, w_text=None, *, max_tile_s=1024):
    """Build a jitted MFModel.forward for a fixed set of weights.

    P:      f32 [num_models, dim]    (nn.Embedding weight)
    w_cls:  f32 [num_classes, dim]   (torch Linear(dim, C).weight)
    w_up:   f32 [text_dim, 768]      (torch Linear(768, text_dim).weight) or None
    w_text: f32 [dim, text_dim]      (torch Linear(text_dim, dim).weight) or None

    Returns forward(model_id, last_hidden_state, attention_mask) where
      model_id:          int32 [B]
      last_hidden_state: [Bp, S, H] (or [S, H]) precomputed BERT token embeds
      attention_mask:    [Bp, S]    (or [S])    0/1 mask
    and the result is squeezed like torch (shape [B] for one prompt, C == 1).

    The up_proj.text_proj fold and all weight casts run ONCE here (weights are
    static), not on the per-call path.
    """
    P = jnp.asarray(P, jnp.float32)
    w_cls = jnp.asarray(w_cls, jnp.float32)
    num_models, dim = P.shape
    C = int(w_cls.shape[0])
    assert w_cls.shape[1] == dim

    # Fold up_proj and text_proj into a single [H, dim] matrix (exact: there is
    # no nonlinearity between them). Cached on device in this closure.
    w_comb = None
    for m in (w_up, w_text):
        if m is None:
            continue
        mt = jnp.asarray(m, jnp.float32).T
        w_comb = mt if w_comb is None else w_comb @ mt
    if w_comb is None:
        w_comb = jnp.eye(dim, dtype=jnp.float32)
    H = int(w_comb.shape[0])
    assert w_comb.shape == (H, dim)

    @jax.jit
    def forward(model_id, last_hidden_state, attention_mask):
        model_id = jnp.asarray(model_id, jnp.int32)
        B = int(model_id.shape[0])
        if last_hidden_state.ndim == 2:
            last_hidden_state = last_hidden_state[None]
        if attention_mask.ndim == 1:
            attention_mask = attention_mask[None]
        Bp, S, Hh = last_hidden_state.shape
        assert Hh == H, (Hh, H)
        assert attention_mask.shape == (Bp, S)

        # In-kernel dynamic embedding gather replaced by a (tiny) pre-gather;
        # fuses into this jit and avoids DMAing all of P / per-row sublane loads.
        me = P[model_id]                                             # [B, dim]

        # Sequence tiling: one full-sequence tile at BERT lengths (S <= 512);
        # cdiv tiling capped at max_tile_s above that so the per-step VMEM
        # footprint stays bounded on every generation (v7x: 64 MiB physical).
        if S <= max_tile_s:
            tile_s, num_s_tiles = S, 1
        else:
            tile_s = max_tile_s
            num_s_tiles = pl.cdiv(S, tile_s)
        padded_S = tile_s * num_s_tiles

        mask = attention_mask.astype(jnp.float32)
        hidden = last_hidden_state       # no wrapper dtype cast of the big tensor
        if padded_S != S:
            # Rare (long, ragged S): zero-pad so every block is in-bounds; the
            # zero mask keeps the pooling exact.
            hidden = jnp.pad(hidden, ((0, 0), (0, padded_S - S), (0, 0)))
            mask = jnp.pad(mask, ((0, 0), (0, padded_S - S)))
        # [Bp, num_s_tiles, 1, tile_s]: per-tile mask blocks whose last two dims
        # always equal the full dims -> valid layout for any tile_s.
        mask = mask.reshape(Bp, num_s_tiles, 1, tile_s)

        # Invariant inputs (me / w_comb / w_cls) are < 0.5 MiB total, so default
        # double-buffering is free VMEM-wise; pl.Buffered(1) is not needed here.
        logits = pl.pallas_call(
            _mf_fused_kernel,
            out_shape=jax.ShapeDtypeStruct((Bp, B, C), jnp.float32),
            grid_spec=pltpu.PrefetchScalarGridSpec(
                num_scalar_prefetch=0,
                grid=(Bp, num_s_tiles),
                in_specs=[
                    pl.BlockSpec((B, dim), lambda p, s: (0, 0)),            # me
                    pl.BlockSpec((H, dim), lambda p, s: (0, 0)),            # w_comb
                    pl.BlockSpec((C, dim), lambda p, s: (0, 0)),            # w_cls
                    pl.BlockSpec((1, tile_s, H), lambda p, s: (p, s, 0)),   # hidden
                    pl.BlockSpec((1, 1, 1, tile_s),
                                 lambda p, s: (p, s, 0, 0)),                # mask
                ],
                out_specs=pl.BlockSpec((1, B, C), lambda p, s: (p, 0, 0)),
                scratch_shapes=[
                    pltpu.VMEM((1, H), jnp.float32),   # pooled-sum accumulator
                    pltpu.VMEM((1, 1), jnp.float32),   # token-count accumulator
                ],
            ),
            compiler_params=pltpu.CompilerParams(
                # prompt axis is independent -> parallel (engages both TCs on
                # v7x); sequence axis is a reduction into scratch -> arbitrary.
                dimension_semantics=("parallel", "arbitrary"),
            ),
        )(me, w_comb, w_cls, hidden, mask)

        # torch: .squeeze()
        return jnp.squeeze(logits)

    return forward


def _mf_forward_reference(model_id, P, last_hidden_state, attention_mask,
                          w_up, w_text, w_cls):
    """Pure-JAX f32 reference mirroring the PyTorch forward exactly."""
    me = P[model_id]                                                 # [B, dim]
    me = me / jnp.maximum(
        jnp.sqrt(jnp.sum(me * me, axis=1, keepdims=True)), 1e-12)
    mask = attention_mask.astype(jnp.float32)                        # [Bp, S]
    summed = jnp.einsum('ps,psh->ph', mask, last_hidden_state)       # [Bp, H]
    cnt = jnp.maximum(jnp.sum(mask, axis=1, keepdims=True), 1e-9)
    prompt = summed / cnt
    if w_up is not None:
        prompt = prompt @ w_up.T
    if w_text is not None:
        prompt = prompt @ w_text.T                                   # [Bp, dim]
    x = me[None, :, :] * prompt[:, None, :]                          # [Bp, B, dim]
    return jnp.squeeze(jnp.einsum('pbd,cd->pbc', x, w_cls))


if __name__ == "__main__":
    # Small synthetic shapes consistent with MFModel.__init__.
    dim = 128          # model-embedding dim
    num_models = 8
    bert_hidden = 256  # stand-in for BERT's 768 hidden size
    text_dim = 512     # != bert_hidden -> up_proj path exercised
    num_classes = 1

    key = jax.random.PRNGKey(0)
    k1, k2, k3, k4, k5, k6 = jax.random.split(key, 6)

    # Deterministic parameters (torch Linear weight layout: [out, in]).
    P = 0.1 * jax.random.normal(k1, (num_models, dim), jnp.float32)
    w_up = 0.05 * jax.random.normal(k2, (text_dim, bert_hidden), jnp.float32)
    w_text = 0.05 * jax.random.normal(k3, (dim, text_dim), jnp.float32)
    w_cls = 0.05 * jax.random.normal(k4, (num_classes, dim), jnp.float32)

    # One-time setup: folds up_proj.text_proj, returns a jitted forward.
    forward = make_mf_forward(P, w_cls, w_up, w_text)

    # --- Case 1: torch forward / pred_win_rate path (single prompt, 2 models).
    seq_len = 8
    hidden1 = jax.random.normal(k5, (1, seq_len, bert_hidden), jnp.float32)
    mask1 = (jnp.arange(seq_len) < 6).astype(jnp.float32)[None, :]
    model_id = jnp.array([1, 3], dtype=jnp.int32)

    logits1 = forward(model_id, hidden1, mask1)
    jax.block_until_ready(logits1)
    assert logits1.shape == (2,), logits1.shape
    ref1 = _mf_forward_reference(model_id, P, hidden1, mask1, w_up, w_text, w_cls)
    assert bool(jnp.allclose(logits1, ref1, rtol=5e-3, atol=1e-5)), (logits1, ref1)

    # win-rate head (pure glue, mirrors pred_win_rate)
    winrate = jax.nn.sigmoid(logits1[0] - logits1[1])
    jax.block_until_ready(winrate)

    # --- Case 2: batched prompts + multi-tile ragged sequence (exercises the
    # parallel prompt axis, the sequence accumulator and the zero-padded tail).
    forward_tiled = make_mf_forward(P, w_cls, w_up, w_text, max_tile_s=8)
    bp, seq2 = 3, 20                      # 20 -> 3 tiles of 8 (padded to 24)
    hidden2 = jax.random.normal(k6, (bp, seq2, bert_hidden), jnp.float32)
    lens = jnp.array([20, 13, 7])
    mask2 = (jnp.arange(seq2)[None, :] < lens[:, None]).astype(jnp.float32)

    logits2 = forward_tiled(model_id, hidden2, mask2)
    jax.block_until_ready(logits2)
    assert logits2.shape == (bp, 2), logits2.shape
    ref2 = _mf_forward_reference(model_id, P, hidden2, mask2, w_up, w_text, w_cls)
    assert bool(jnp.allclose(logits2, ref2, rtol=5e-3, atol=1e-5)), (logits2, ref2)

    print("KERNEL_OK")
</pallas_src>

<mosaic_0001>
module attributes {stable_mosaic.version = 11 : i64} {
  func.func @_mf_fused_kernel(%arg0: i32, %arg1: i32, %arg2: memref<2x128xf32, #tpu.memory_space<vmem>>, %arg3: memref<256x128xf32, #tpu.memory_space<vmem>>, %arg4: memref<1x128xf32, #tpu.memory_space<vmem>>, %arg5: memref<1x8x256xf32, #tpu.memory_space<vmem>>, %arg6: memref<1x1x1x8xf32, #tpu.memory_space<vmem>>, %arg7: memref<1x2x1xf32, #tpu.memory_space<vmem>>, %arg8: memref<1x256xf32, #tpu.memory_space<vmem>>, %arg9: memref<1x1xf32, #tpu.memory_space<vmem>>) attributes {dimension_semantics = [#tpu.dimension_semantics<parallel>, #tpu.dimension_semantics<arbitrary>], iteration_bounds = array<i64: 1, 1>, scalar_prefetch = 0 : i64, scratch_operands = 2 : i64, tpu.core_type = #tpu.core_type<tc>, window_params = [{pipeline_mode = #tpu.pipeline_mode<synchronous>, transform_indices = @transform_0, window_bounds = array<i64: 2, 128>}, {pipeline_mode = #tpu.pipeline_mode<synchronous>, transform_indices = @transform_1, window_bounds = array<i64: 256, 128>}, {pipeline_mode = #tpu.pipeline_mode<synchronous>, transform_indices = @transform_2, window_bounds = array<i64: 1, 128>}, {transform_indices = @transform_3, window_bounds = array<i64: 1, 8, 256>}, {transform_indices = @transform_4, window_bounds = array<i64: 1, 1, 1, 8>}, {transform_indices = @transform_5, window_bounds = array<i64: 1, 2, 1>}]} {
    %c0_i32 = arith.constant 0 : i32
    %0 = arith.cmpi eq, %arg1, %c0_i32 : i32
    %1 = arith.extui %0 : i1 to i32
    %c0_i32_0 = arith.constant 0 : i32
    %2 = arith.cmpi ne, %1, %c0_i32_0 : i32
    scf.if %2 {
      %cst_18 = arith.constant 0.000000e+00 : f32
      %19 = vector.broadcast %cst_18 : f32 to vector<1x256xf32>
      %c0_19 = arith.constant 0 : index
      %c0_20 = arith.constant 0 : index
      %20 = vector.load %arg8[%c0_19, %c0_20] : memref<1x256xf32, #tpu.memory_space<vmem>>, vector<1x256xf32>
      tpu.vector_store %arg8[%c0_19, %c0_20], %19 {strides = array<i32>} : memref<1x256xf32, #tpu.memory_space<vmem>>, vector<1x256xf32>,
      %cst_21 = arith.constant 0.000000e+00 : f32
      %21 = vector.broadcast %cst_21 : f32 to vector<1x1xf32>
      %c0_22 = arith.constant 0 : index
      %c0_23 = arith.constant 0 : index
      %22 = vector.load %arg9[%c0_22, %c0_23] : memref<1x1xf32, #tpu.memory_space<vmem>>, vector<1x1xf32>
      tpu.vector_store %arg9[%c0_22, %c0_23], %21 {strides = array<i32>} : memref<1x1xf32, #tpu.memory_space<vmem>>, vector<1x1xf32>,
    } else {
    }
    %c0 = arith.constant 0 : index
    %c0_1 = arith.constant 0 : index
    %c0_2 = arith.constant 0 : index
    %c0_3 = arith.constant 0 : index
    %3 = vector.load %arg6[%c0, %c0_1, %c0_2, %c0_3] : memref<1x1x1x8xf32, #tpu.memory_space<vmem>>, vector<1x1x1x8xf32>
    %4 = vector.shape_cast %3 : vector<1x1x1x8xf32> to vector<1x8xf32>
    %c0_4 = arith.constant 0 : index
    %c0_5 = arith.constant 0 : index
    %5 = vector.load %arg8[%c0_4, %c0_5] : memref<1x256xf32, #tpu.memory_space<vmem>>, vector<1x256xf32>
    %c0_6 = arith.constant 0 : index
    %c0_7 = arith.constant 0 : index
    %c0_8 = arith.constant 0 : index
    %6 = vector.load %arg5[%c0_6, %c0_7, %c0_8] : memref<1x8x256xf32, #tpu.memory_space<vmem>>, vector<1x8x256xf32>
    %7 = vector.shape_cast %6 : vector<1x8x256xf32> to vector<8x256xf32>
    %cst = arith.constant dense<0.000000e+00> : vector<1x256xf32>
    %8 = tpu.matmul %4, %7, %cst {dimension_numbers = #tpu.dot_dimension_numbers<[1], [0], [0], [1], [0, 0, 1, 1], [], []>} : vector<1x8xf32>, vector<8x256xf32>, vector<1x256xf32> -> vector<1x256xf32>
    %9 = arith.addf %5, %8 : vector<1x256xf32>
    %c0_9 = arith.constant 0 : index
    %c0_10 = arith.constant 0 : index
    %10 = vector.load %arg8[%c0_9, %c0_10] : memref<1x256xf32, #tpu.memory_space<vmem>>, vector<1x256xf32>
    tpu.vector_store %arg8[%c0_9, %c0_10], %9 {strides = array<i32>} : memref<1x256xf32, #tpu.memory_space<vmem>>, vector<1x256xf32>,
    %c0_11 = arith.constant 0 : index
    %c0_12 = arith.constant 0 : index
    %11 = vector.load %arg9[%c0_11, %c0_12] : memref<1x1xf32, #tpu.memory_space<vmem>>, vector<1x1xf32>
    %cst_13 = arith.constant dense<0.000000e+00> : vector<1xf32>
    %12 = vector.multi_reduction <add>, %4, %cst_13 [1] : vector<1x8xf32> to vector<1xf32>
    %13 = vector.shape_cast %12 : vector<1xf32> to vector<1x1xf32>
    %14 = arith.addf %11, %13 : vector<1x1xf32>
    %c0_14 = arith.constant 0 : index
    %c0_15 = arith.constant 0 : index
    %15 = vector.load %arg9[%c0_14, %c0_15] : memref<1x1xf32, #tpu.memory_space<vmem>>, vector<1x1xf32>
    tpu.vector_store %arg9[%c0_14, %c0_15], %14 {strides = array<i32>} : memref<1x1xf32, #tpu.memory_space<vmem>>, vector<1x1xf32>,
    %c0_i32_16 = arith.constant 0 : i32
    %16 = arith.cmpi eq, %arg1, %c0_i32_16 : i32
    %17 = arith.extui %16 : i1 to i32
    %c0_i32_17 = arith.constant 0 : i32
    %18 = arith.cmpi ne, %17, %c0_i32_17 : i32
    scf.if %18 {
      %c0_18 = arith.constant 0 : index
      %c0_19 = arith.constant 0 : index
      %19 = vector.load %arg8[%c0_18, %c0_19] : memref<1x256xf32, #tpu.memory_space<vmem>>, vector<1x256xf32>
      %c0_20 = arith.constant 0 : index
      %c0_21 = arith.constant 0 : index
      %20 = vector.load %arg9[%c0_20, %c0_21] : memref<1x1xf32, #tpu.memory_space<vmem>>, vector<1x1xf32>
      %cst_22 = arith.constant 9.99999971E-10 : f32
      %21 = vector.broadcast %cst_22 : f32 to vector<1x1xf32>
      %22 = arith.maximumf %20, %21 : vector<1x1xf32>
      %23 = vector.broadcast %22 : vector<1x1xf32> to vector<1x256xf32>
      %24 = arith.divf %19, %23 : vector<1x256xf32>
      %c0_23 = arith.constant 0 : index
      %c0_24 = arith.constant 0 : index
      %25 = vector.load %arg3[%c0_23, %c0_24] : memref<256x128xf32, #tpu.memory_space<vmem>>, vector<256x128xf32>
      %cst_25 = arith.constant dense<0.000000e+00> : vector<1x128xf32>
      %26 = tpu.matmul %24, %25, %cst_25 {dimension_numbers = #tpu.dot_dimension_numbers<[1], [0], [0], [1], [0, 0, 1, 1], [], []>} : vector<1x256xf32>, vector<256x128xf32>, vector<1x128xf32> -> vector<1x128xf32>
      %c0_26 = arith.constant 0 : index
      %c0_27 = arith.constant 0 : index
      %27 = vector.load %arg2[%c0_26, %c0_27] : memref<2x128xf32, #tpu.memory_space<vmem>>, vector<2x128xf32>
      %28 = arith.mulf %27, %27 : vector<2x128xf32>
      %cst_28 = arith.constant dense<0.000000e+00> : vector<2xf32>
      %29 = vector.multi_reduction <add>, %28, %cst_28 [1] : vector<2x128xf32> to vector<2xf32>
      %30 = vector.shape_cast %29 : vector<2xf32> to vector<2x1xf32>
      %cst_29 = arith.constant 1.000000e-24 : f32
      %31 = vector.broadcast %cst_29 : f32 to vector<2x1xf32>
      %32 = arith.maximumf %30, %31 : vector<2x1xf32>
      %33 = math.rsqrt %32 : vector<2x1xf32>
      %34 = vector.broadcast %33 : vector<2x1xf32> to vector<2x128xf32>
      %35 = arith.mulf %27, %34 : vector<2x128xf32>
      %36 = vector.broadcast %26 : vector<1x128xf32> to vector<2x128xf32>
      %37 = arith.mulf %35, %36 : vector<2x128xf32>
      %c0_30 = arith.constant 0 : index
      %c0_31 = arith.constant 0 : index
      %38 = vector.load %arg4[%c0_30, %c0_31] : memref<1x128xf32, #tpu.memory_space<vmem>>, vector<1x128xf32>
      %39 = vector.broadcast %38 : vector<1x128xf32> to vector<2x128xf32>
      %40 = arith.mulf %37, %39 : vector<2x128xf32>
      %cst_32 = arith.constant dense<0.000000e+00> : vector<2xf32>
      %41 = vector.multi_reduction <add>, %40, %cst_32 [1] : vector<2x128xf32> to vector<2xf32>
      %42 = vector.shape_cast %41 : vector<2xf32> to vector<2x1xf32>
      %c0_33 = arith.constant 0 : index
      %c0_34 = arith.constant 0 : index
      %c0_35 = arith.constant 0 : index
      %43 = vector.load %arg7[%c0_33, %c0_34, %c0_35] : memref<1x2x1xf32, #tpu.memory_space<vmem>>, vector<1x2x1xf32>
      %44 = vector.shape_cast %43 : vector<1x2x1xf32> to vector<2x1xf32>
      %45 = vector.shape_cast %42 : vector<2x1xf32> to vector<1x2x1xf32>
      tpu.vector_store %arg7[%c0_33, %c0_34, %c0_35], %45 {strides = array<i32>} : memref<1x2x1xf32, #tpu.memory_space<vmem>>, vector<1x2x1xf32>,
    } else {
    }
    return
  }
  func.func @transform_0(%arg0: i32, %arg1: i32) -> (i32, i32) {
    %c0_i32 = arith.constant 0 : i32
    %c0_i32_0 = arith.constant 0 : i32
    %c0_i32_1 = arith.constant 0 : i32
    return %c0_i32, %c0_i32_0 : i32, i32
  }
  func.func @transform_1(%arg0: i32, %arg1: i32) -> (i32, i32) {
    %c0_i32 = arith.constant 0 : i32
    %c0_i32_0 = arith.constant 0 : i32
    %c0_i32_1 = arith.constant 0 : i32
    return %c0_i32, %c0_i32_0 : i32, i32
  }
  func.func @transform_2(%arg0: i32, %arg1: i32) -> (i32, i32) {
    %c0_i32 = arith.constant 0 : i32
    %c0_i32_0 = arith.constant 0 : i32
    %c0_i32_1 = arith.constant 0 : i32
    return %c0_i32, %c0_i32_0 : i32, i32
  }
  func.func @transform_3(%arg0: i32, %arg1: i32) -> (i32, i32, i32) {
    %c0_i32 = arith.constant 0 : i32
    %c0_i32_0 = arith.constant 0 : i32
    return %arg0, %arg1, %c0_i32 : i32, i32, i32
  }
  func.func @transform_4(%arg0: i32, %arg1: i32) -> (i32, i32, i32, i32) {
    %c0_i32 = arith.constant 0 : i32
    %c0_i32_0 = arith.constant 0 : i32
    %c0_i32_1 = arith.constant 0 : i32
    return %arg0, %arg1, %c0_i32, %c0_i32_0 : i32, i32, i32, i32
  }
  func.func @transform_5(%arg0: i32, %arg1: i32) -> (i32, i32, i32) {
    %c0_i32 = arith.constant 0 : i32
    %c0_i32_0 = arith.constant 0 : i32
    %c0_i32_1 = arith.constant 0 : i32
    return %arg0, %c0_i32, %c0_i32_0 : i32, i32, i32
  }
}

</mosaic_0001>

<bundles_post_ra>
// kernel: forward.1
= control target key start
LH: loop header
LB: loop body
LE: loop exit
PB: predicated region body
PF: predicated region fallthrough
CT: control target
= control target key end

     0   :  { %10 = vsyncpa [#allocation5], 0  ;;  %s422_s18 = smov [#allocation4]   ;;  %s502_s0 = inlined_call_operand.vmem [shape: f32[2,128], index: 0, kind: input, shape index: {}]   ;;  %s503_s1 = inlined_call_operand.hbm [shape: f32[256,128], index: 1, kind: input, shape index: {}]   ;;  %s504_s2 = inlined_call_operand.vmem [shape: f32[1,128], index: 2, kind: input, shape index: {}]   ;;  %s505_s3 = inlined_call_operand.vmem [shape: f32[1,8,256], index: 3, kind: input, shape index: {}]   ;;  %s506_s4 = inlined_call_operand.vmem [shape: f32[1,1,1,8], index: 4, kind: input, shape index: {}]   ;;  %s507_s5 = inlined_call_operand.vmem [shape: f32[1,2,1], index: 5, kind: output, shape index: {}]  }
   0x1   :  { %s18_s19 = sshll.u32 %s422_s18, 4  ;;  %s398_s22 = scalar_lea.hbm %s503_s1, 4096  ;;  %s19_s19 = int_to_ptr.vmem [resolvable:$true] %s18_s19 }
   0x2   :  { %p399_p0 = scmp.ne.s32.totalorder %s503_s1, %s398_s22  ;;  %p402_p1 = scmp.lt.u32.totalorder %s398_s22, %s503_s1 }
   0x4   :  { %p404_p2 = pnand %p402_p1, %p399_p0 }
   0x6   :  { %407 = shalt.err (!%p404_p2)
}
   0x7   :  { %s408_s27 = scalar_lea.vmem %s19_s19, 4096  ;;  %p413_p4 = scmp.lt.s32.totalorder %s19_s19, %s19_s19 }
   0x8   :  { %p409_p3 = scmp.ne.s32.totalorder %s19_s19, %s408_s27  ;;  %p414_p5 = scmp.lt.s32.totalorder %s408_s27, %s408_s27 }
   0xa   :  { %p415_p6 = por %p414_p5, %p413_p4 }
   0xc   :  { %p416_p7 = pnand %p415_p6, %p409_p3 }
   0xe   :  { %419 = shalt.err (!%p416_p7)
}
   0xf   :  { %s423_s28 = smov 128   ;;  %s424_s29 = smov 8  }
  0x10   :  { %24 = dma.hbm_to_vmem [thread:$0]  %s503_s1, 4096, %s19_s19, [#allocation5], %s423_s28, %s423_s28, %s424_s29  }
  0x11   :  { %420 = dma.done.wait [#allocation5], 4096  }
  0x12   :  { %421 = vsyncadd [#allocation5], 4294963200  ;;  %v38_v0 = vlaneseq  ;;  %vm43_vm0 = vcmask 0   ;;  %v425_v1 = vmov 0.0   ;;  %vm149_vm2 = vcmask 57344   ;;  %v48_v4 = vld [vmem:[%s505_s3 + $0x8] sm:$0xff] }
  0x13   :  { %44 = vst.msk [vmem:[#allocation3] sm:$0x1] %vm43_vm0, %v425_v1  ;;  %117 = vmatprep.mubr.f32.mxu0 %v425_v1  ;;  %v45_v3 = vld [vmem:[%s506_s4] sm:$0x1]  ;;  %vm49_vm3 = vcmask 64512   ;;  %53 = vmatprep.subr.mxu0 %v48_v4  ;;  %v426_v7 = vmov 0  }
  0x14   :  { %vm472_vm1 = vcmp.lt.s32.totalorder %v38_v0, 256  ;;  %v47_v5 = vld [vmem:[%s505_s3] sm:$0xff]  ;;  %v150_v6 = vsel %vm149_vm2, %v45_v3, 0.0  ;;  %393 = vset.pattern.permute.xlu0 %v426_v7  ;;  %v190_v9 = vld [vmem:[#allocation4 + $0x88] sm:$0xff]  ;;  %v191_v13 = vld [vmem:[#allocation4 + $0x90] sm:$0xff]  ;;  %vm288_vm4 = vcmask 1041408  }
  0x15   :  { %42 = vst.msk [vmem:[#allocation2] sm:$0x3] %vm472_vm1, %v425_v1  ;;  %151 = vadd.xlane.f32.xlu0 %v150_v6  ;;  %54 = vmatpush1.msra.mxu0 %v47_v5  ;;  %v189_v8 = vld [vmem:[#allocation4 + $0x80] sm:$0xff]  ;;  %v174_v12 = vld [vmem:[#allocation4 + $0x8] sm:$0xff]  ;;  %v192_v14 = vld [vmem:[#allocation4 + $0x98] sm:$0xff]  ;;  %v131_v5 = vshrl.u32 %v38_v0, 7 }
  0x16   :  { %318 = vmatmul.mubr.msk.f32.vlgmr.msra.gmra.mrb[0].mxu0 %vm49_vm3, %v45_v3  ;;  %v173_v10 = vld [vmem:[#allocation4] sm:$0xff]  ;;  %v355_v11 = vpack.c.bf16 %v190_v9, %v189_v8  ;;  %v359_v16 = vpack.c.bf16 %v192_v14, %v191_v13  ;;  %v175_v17 = vld [vmem:[#allocation4 + $0x10] sm:$0xff]  ;;  %v176_v18 = vld [vmem:[#allocation4 + $0x18] sm:$0xff]  ;;  %v427_v1 = vmov 1966171168   ;;  %vm311_vm5 = vcmask 1024  }
  0x17   :  { %v357_v15 = vpack.c.bf16 %v174_v12, %v173_v10  ;;  %v361_v19 = vpack.c.bf16 %v176_v18, %v175_v17  ;;  %v193_v20 = vld [vmem:[#allocation4 + $0xa0] sm:$0xff]  ;;  %v194_v21 = vld [vmem:[#allocation4 + $0xa8] sm:$0xff]  ;;  %v195_v25 = vld [vmem:[#allocation4 + $0xb0] sm:$0xff]  ;;  %v128_v3 = vunpack.c.l.s4 %v427_v1  ;;  %v169_v14 = vsub.s32 0, %v131_v5 }
  0x18   :  { %356 = vmatprep.subr.bf16.mxu1 %v355_v11  ;;  %v363_v22 = vpack.c.bf16 %v194_v21, %v193_v20  ;;  %v177_v23 = vld [vmem:[#allocation4 + $0x20] sm:$0xff]  ;;  %v178_v24 = vld [vmem:[#allocation4 + $0x28] sm:$0xff]  ;;  %v196_v27 = vld [vmem:[#allocation4 + $0xb8] sm:$0xff]  ;;  %v212_v18 = vsub.s32 1, %v131_v5 }
  0x19   :  { %358 = vmatpush3.bf16.msra.mxu1 %v357_v15  ;;  %v365_v26 = vpack.c.bf16 %v178_v24, %v177_v23  ;;  %v179_v28 = vld [vmem:[#allocation4 + $0x30] sm:$0xff]  ;;  %v180_v29 = vld [vmem:[#allocation4 + $0x38] sm:$0xff]  ;;  %v367_v30 = vpack.c.bf16 %v196_v27, %v195_v25  ;;  %v197_v37 = vld [vmem:[#allocation4 + $0xc0] sm:$0xff]  ;;  %v129_v4 = vunpack.c.0.s8 %v128_v3 }
  0x1a   :  { %360 = vmatprep.subr.bf16.mxu1 %v359_v16  ;;  %v369_v31 = vpack.c.bf16 %v180_v29, %v179_v28  ;;  %v148_v32 = vld [vmem:[#allocation3] sm:$0x1]  ;;  %v198_v38 = vld [vmem:[#allocation4 + $0xc8] sm:$0xff]  ;;  %v181_v40 = vld [vmem:[#allocation4 + $0x40] sm:$0xff] }
  0x1b   :  { %v371_v39 = vpack.c.bf16 %v198_v38, %v197_v37  ;;  %v182_v41 = vld [vmem:[#allocation4 + $0x48] sm:$0xff]  ;;  %v199_v43 = vld [vmem:[#allocation4 + $0xd0] sm:$0xff]  ;;  %v200_v44 = vld [vmem:[#allocation4 + $0xd8] sm:$0xff]  ;;  %v132_v7 = vsub.s32 %v129_v4, %v131_v5 }
  0x1c   :  { %v373_v42 = vpack.c.bf16 %v182_v41, %v181_v40  ;;  %v183_v45 = vld [vmem:[#allocation4 + $0x50] sm:$0xff]  ;;  %v375_v46 = vpack.c.bf16 %v200_v44, %v199_v43  ;;  %v184_v47 = vld [vmem:[#allocation4 + $0x58] sm:$0xff]  ;;  %v201_v48 = vld [vmem:[#allocation4 + $0xe0] sm:$0xff] }
  0x1d   :  { %362 = vmatpush3.bf16.msra.mxu1 %v361_v19  ;;  %v202_v49 = vld [vmem:[#allocation4 + $0xe8] sm:$0xff]  ;;  %v377_v50 = vpack.c.bf16 %v184_v47, %v183_v45  ;;  %v185_v52 = vld [vmem:[#allocation4 + $0x60] sm:$0xff]  ;;  %v203_v54 = vld [vmem:[#allocation4 + $0xf0] sm:$0xff] }
  0x1e   :  { %364 = vmatprep.subr.bf16.mxu1 %v363_v22  ;;  %v379_v51 = vpack.c.bf16 %v202_v49, %v201_v48  ;;  %v186_v53 = vld [vmem:[#allocation4 + $0x68] sm:$0xff]  ;;  %v204_v55 = vld [vmem:[#allocation4 + $0xf8] sm:$0xff]  ;;  %v187_v58 = vld [vmem:[#allocation4 + $0x70] sm:$0xff] }
  0x1f   :  { %v381_v56 = vpack.c.bf16 %v186_v53, %v185_v52  ;;  %v383_v57 = vpack.c.bf16 %v204_v55, %v203_v54  ;;  %v188_v59 = vld [vmem:[#allocation4 + $0x78] sm:$0xff] }
  0x20   :  { %v385_v60 = vpack.c.bf16 %v188_v59, %v187_v58  ;;  %v286_v61 = vld [vmem:[%s502_s0] sm:$0x3] }
  0x21   :  { %366 = vmatpush3.bf16.msra.mxu1 %v365_v26  ;;  %v287_v62 = vmul.f32 %v286_v61, %v286_v61  ;;  %v46_v11 = vld [vmem:[#allocation2] sm:$0x3] }
  0x22   :  { %368 = vmatprep.subr.bf16.mxu1 %v367_v30  ;;  %v319_v29 = vld [vmem:[%s504_s2] ss:$0 sm:$0xff] }
  0x23   :  { %v289_v63 = vsel %vm288_vm4, %v287_v62, 0.0 }
  0x24   :  { %290 = vadd.xlane.f32.xlu1 %v289_v63 }
  0x25   :  { %370 = vmatpush3.bf16.msra.mxu1 %v369_v31 }
  0x26   :  { %372 = vmatprep.subr.bf16.mxu1 %v371_v39 }
  0x29   :  { %374 = vmatpush3.bf16.msra.mxu1 %v373_v42 }
  0x2a   :  { %376 = vmatprep.subr.bf16.mxu1 %v375_v46 }
  0x2d   :  { %378 = vmatpush3.bf16.msra.mxu1 %v377_v50 }
  0x2e   :  { %380 = vmatprep.subr.bf16.mxu1 %v379_v51 }
  0x31   :  { %382 = vmatpush3.bf16.msra.mxu1 %v381_v56 }
  0x32   :  { %384 = vmatprep.subr.bf16.mxu1 %v383_v57 }
  0x35   :  { %386 = vmatpush3.bf16.msra.mxu1 %v385_v60 }
  0xa2   :  { %v152_v33 = vpop.xlane.xlu0 %151 }
  0xa3   :  { %v153_v34 = vadd.f32 %v152_v33, %v148_v32 }
  0xa5   :  { %155 = vst.msk [vmem:[#allocation3] sm:$0x1] %vm43_vm0, %v153_v34 }
  0xac   :  { %v160_v35 = vld [vmem:[#allocation3] sm:$0x1] }
  0xad   :  { %v161_v36 = vmax.f32 %v160_v35, 1e-09 }
  0xaf   :  { %164 = vperm.xlu0 %393, %v161_v36  }
  0xb1   :  { %v291_v22 = vpop.xlane.xlu1 %290 }
  0xb2   :  { %v292_v23 = vmax.f32 %v291_v22, 1e-24 }
  0xe9   :  { %v119_v6 = vpop.f32.mrb[0].mxu0 }
  0xea   :  { %v121_v8 = vpop.f32.mrb[1].mxu0 }
  0xeb   :  { %v126_v9 = vcombine.low %v119_v6, %v121_v8 }
  0xed   :  { %v133_v10 = vrot.slane %v126_v9, %v132_v7 }
  0xef   :  { %v140_v12 = vrot.slane %v133_v10, %v132_v7 }
  0xf1   :  { %v142_v13 = vadd.f32 %v140_v12, %v46_v11 }
  0xf3   :  { %147 = vst.msk [vmem:[#allocation2] sm:$0x3] %vm472_vm1, %v142_v13 }
  0xfa   :  { %v159_v17 = vld [vmem:[#allocation2] sm:$0x3] }
 0x12e   :  { %v165_v15 = vpop.permute.xlu0 %164 }
 0x12f   :  { %v170_v16 = vrot.slane %v165_v15, %v169_v14 }
 0x131   :  { %394 = vrcp.f32 %v170_v16 }
 0x132   :  { %396 = vrsqrt.f32 %v292_v23 }
 0x13b   :  { %v395_v19 = vpop.eup %394 }
 0x13c   :  { %v172_v20 = vmul.f32 %v395_v19, %v159_v17  ;;  %v397_v24 = vpop.eup %396 }
 0x13d   :  { %v294_v27 = vmul.f32 %v397_v24, %v286_v61 }
 0x13e   :  { %v213_v0 = vrot.slane %v172_v20, %v212_v18  ;;  %v209_v21 = vrot.slane %v172_v20, %v169_v14 }
 0x140   :  { %280 = vmatprep.mubr.f32.mxu1 %v213_v0 }
 0x141   :  { %281 = vmatmul.mubr.f32.vlgmr.msra.gmra.mrb[0].mxu1 %v209_v21 }
 0x214   :  { %v352_v25 = vpop.f32.mrb[0].mxu1 }
 0x215   :  { %v353_v26 = vpop.f32.mrb[1].mxu1 }
 0x216   :  { %v354_v2 = vadd.f32 %v353_v26, %v352_v25 }
 0x218   :  { %v298_v28 = vrot.slane %v354_v2, %v169_v14 }
 0x21a   :  { %v299_v30 = vmul.f32 %v298_v28, %v294_v27 }
 0x21c   :  { %v307_v31 = vmul.f32 %v319_v29, %v299_v30 }
 0x21e   :  { %v308_v32 = vsel %vm288_vm4, %v307_v31, 0.0 }
 0x21f   :  { %309 = vadd.xlane.f32.xlu1 %v308_v32 }
 0x2ac   :  { %v310_v33 = vpop.xlane.xlu1 %309 }
 0x2ad   :  { %312 = vst.msk [vmem:[%s507_s5] sm:$0x3] %vm311_vm5, %v310_v33 }
 0x2ae   :  { %317 = vsyncpa [#allocation5], 1 }

</bundles_post_ra>
